<compile_context>
chip_gen: v5e
topology: v5e:2x2
jax: 0.10.0
libtpu: 0.0.40
codegen_flags: <defaults>
</compile_context>

<pallas_src>
import jax
import jax.numpy as jnp
from jax.experimental import pallas as pl
from jax.experimental.pallas import tpu as pltpu


def _prod(dims):
    p = 1
    for d in dims:
        p *= int(d)
    return p


def _choose_slab(total):
    """Pick (rows, lane) with lane a multiple of 128 dividing `total`.

    For a pure HBM->HBM DMA any contiguous factorization works; we keep the
    lane a multiple of 128 for friendly descriptors.  Returns None if the
    element count is not divisible by 128 (caller falls back to the
    metadata-only path, which is always correct).
    """
    for lane in (1024, 512, 256, 128):
        if total % lane == 0:
            return total // lane, lane
    return None


def _row_chunks(rows, lane, itemsize, *, max_chunks=4, min_chunk_bytes=128 * 1024):
    """Split `rows` into a few large contiguous chunks for overlapping DMAs.

    Every chunk boundary is static (computed in Python); the remainder is
    folded into the last chunk so there are no ragged/masked transfers.
    """
    total_bytes = rows * lane * itemsize
    n = max(1, min(max_chunks, total_bytes // min_chunk_bytes, rows))
    n = int(n)
    base = rows // n
    chunks = []
    start = 0
    for c in range(n):
        size = base if c < n - 1 else rows - base * (n - 1)
        chunks.append((start, size))
        start += size
    return chunks


def _make_hbm_copy_kernel(chunks):
    """Kernel: direct HBM->HBM DMA copy over a few large static chunks."""

    def kernel(x_hbm, o_hbm, sem):
        copies = []
        for c, (start, size) in enumerate(chunks):
            cp = pltpu.make_async_copy(
                x_hbm.at[pl.ds(start, size), :],
                o_hbm.at[pl.ds(start, size), :],
                sem.at[c],
            )
            cp.start()
            copies.append(cp)
        # Wait on all outstanding chunk DMAs before the kernel returns.
        for cp in copies:
            cp.wait()

    return kernel


def pallas_reshape(x, target_shape, *, materialize=False):
    """Equivalent of torch: x.reshape((x.shape[0],) + target_shape).

    materialize=False (default): metadata-only reshape — zero HBM traffic.
    materialize=True: force a bit-exact physical copy via an HBM->HBM DMA
    Pallas kernel (useful when a distinct buffer is required).
    """
    batch = x.shape[0]
    feat = _prod(x.shape[1:])
    tgt_feat = _prod(target_shape)
    assert feat == tgt_feat, "reshape size mismatch"

    out_shape = (batch,) + tuple(target_shape)

    if not materialize:
        # Per the performance review: a contiguous reshape is metadata-only;
        # skipping the copy eliminates the whole 2*N*itemsize HBM round trip.
        return x.reshape(out_shape)

    total = batch * feat
    itemsize = jnp.dtype(x.dtype).itemsize

    slab = _choose_slab(total)
    if slab is None:
        # Cannot form a 128-lane-aligned slab; the metadata-only reshape is
        # still the correct (and fastest) result.
        return x.reshape(out_shape)

    rows, lane = slab
    chunks = _row_chunks(rows, lane, itemsize)

    # Flatten to the aligned slab (metadata-only, row-major order preserved).
    x2d = x.reshape(rows, lane)

    y2d = pl.pallas_call(
        _make_hbm_copy_kernel(chunks),
        out_shape=jax.ShapeDtypeStruct((rows, lane), x.dtype),
        in_specs=[pl.BlockSpec(memory_space=pl.ANY)],
        out_specs=pl.BlockSpec(memory_space=pl.ANY),
        scratch_shapes=[pltpu.SemaphoreType.DMA((len(chunks),))],
        cost_estimate=pl.CostEstimate(
            flops=0,
            transcendentals=0,
            bytes_accessed=2 * total * itemsize,
        ),
    )(x2d)

    # Final reshape is metadata-only glue.
    return y2d.reshape(out_shape)


if __name__ == "__main__":
    key = jax.random.PRNGKey(0)

    # --- Test 1: module-spec shapes, default (metadata-only) fast path. ---
    # NCHW input: batch=2, channels=4, H=W=16  ->  reshape to (16, 64)
    x = jax.random.normal(key, (2, 4, 16, 16), dtype=jnp.float32)
    target_shape = (16, 64)
    y_ref = x.reshape((x.shape[0],) + target_shape)

    y_fast = jax.block_until_ready(pallas_reshape(x, target_shape))
    assert y_fast.shape == (2, 16, 64), y_fast.shape
    assert jnp.array_equal(y_fast, y_ref), "mismatch (metadata path)"

    # --- Test 2: same shapes, force the Pallas HBM->HBM DMA copy kernel. ---
    y_copy = jax.block_until_ready(pallas_reshape(x, target_shape, materialize=True))
    assert y_copy.shape == (2, 16, 64), y_copy.shape
    assert jnp.array_equal(y_copy, y_ref), "mismatch (HBM->HBM copy path)"

    # --- Test 3: larger multi-chunk case to exercise the chunking logic. ---
    x2 = jax.random.normal(jax.random.PRNGKey(0), (4, 8, 64, 128), dtype=jnp.float32)
    tgt2 = (64, 1024)
    y2_ref = x2.reshape((4,) + tgt2)
    y2 = jax.block_until_ready(pallas_reshape(x2, tgt2, materialize=True))
    assert y2.shape == (4, 64, 1024), y2.shape
    assert jnp.array_equal(y2, y2_ref), "mismatch (multi-chunk copy path)"

    print("KERNEL_OK")
</pallas_src>

<mosaic_0001>
module attributes {stable_mosaic.version = 11 : i64} {
  func.func @kernel(%arg0: memref<2x1024xf32, #tpu.memory_space<any>>, %arg1: memref<2x1024xf32, #tpu.memory_space<any>>, %arg2: memref<1x!tpu.dma_semaphore, #tpu.memory_space<semaphore_mem>>) attributes {dimension_semantics = [], scalar_prefetch = 0 : i64, scratch_operands = 1 : i64, tpu.core_type = #tpu.core_type<tc>} {
    %c0_i32 = arith.constant 0 : i32
    %c0_i32_0 = arith.constant 0 : i32
    %c0_i32_1 = arith.constant 0 : i32
    %0 = tpu.memref_slice %arg0[%c0_i32_0, %c0_i32_1] : memref<2x1024xf32, #tpu.memory_space<any>> -> memref<2x1024xf32, #tpu.memory_space<any>>
    %c0_i32_2 = arith.constant 0 : i32
    %c0_i32_3 = arith.constant 0 : i32
    %1 = tpu.memref_slice %arg1[%c0_i32_2, %c0_i32_3] : memref<2x1024xf32, #tpu.memory_space<any>> -> memref<2x1024xf32, #tpu.memory_space<any>>
    %2 = tpu.memref_slice %arg2[%c0_i32] : memref<1x!tpu.dma_semaphore, #tpu.memory_space<semaphore_mem>> -> memref<1x!tpu.dma_semaphore, #tpu.memory_space<semaphore_mem>>
    %3 = tpu.memref_squeeze %2 : memref<1x!tpu.dma_semaphore, #tpu.memory_space<semaphore_mem>> -> memref<!tpu.dma_semaphore, #tpu.memory_space<semaphore_mem>>
    tpu.enqueue_dma source(%0 : memref<2x1024xf32, #tpu.memory_space<any>>) target(%1 : memref<2x1024xf32, #tpu.memory_space<any>>) target_semaphore(%3 : memref<!tpu.dma_semaphore, #tpu.memory_space<semaphore_mem>>)
    %c0_i32_4 = arith.constant 0 : i32
    %c0_i32_5 = arith.constant 0 : i32
    %c0_i32_6 = arith.constant 0 : i32
    %4 = tpu.memref_slice %arg0[%c0_i32_5, %c0_i32_6] : memref<2x1024xf32, #tpu.memory_space<any>> -> memref<2x1024xf32, #tpu.memory_space<any>>
    %c0_i32_7 = arith.constant 0 : i32
    %c0_i32_8 = arith.constant 0 : i32
    %5 = tpu.memref_slice %arg1[%c0_i32_7, %c0_i32_8] : memref<2x1024xf32, #tpu.memory_space<any>> -> memref<2x1024xf32, #tpu.memory_space<any>>
    %6 = tpu.memref_slice %arg2[%c0_i32_4] : memref<1x!tpu.dma_semaphore, #tpu.memory_space<semaphore_mem>> -> memref<1x!tpu.dma_semaphore, #tpu.memory_space<semaphore_mem>>
    %7 = tpu.memref_squeeze %6 : memref<1x!tpu.dma_semaphore, #tpu.memory_space<semaphore_mem>> -> memref<!tpu.dma_semaphore, #tpu.memory_space<semaphore_mem>>
    tpu.wait_dma2 semaphore(%7 : memref<!tpu.dma_semaphore, #tpu.memory_space<semaphore_mem>>) src(%4 : memref<2x1024xf32, #tpu.memory_space<any>>) dst(%5 : memref<2x1024xf32, #tpu.memory_space<any>>)
    return
  }
}

</mosaic_0001>

<bundles_post_ra>
// kernel: tpu_custom_call.1
= control target key start
LH: loop header
LB: loop body
LE: loop exit
PB: predicated region body
PF: predicated region fallthrough
CT: control target
= control target key end

     0   :  { %s33_s12 = smov [#allocation2]   ;;  %s34_s13 = smov [#allocation3]   ;;  %s52_s0 = inlined_call_operand.hbm [shape: f32[2,1024], index: 0, kind: input, shape index: {}]   ;;  %s53_s1 = inlined_call_operand.hbm [shape: f32[2,1024], index: 1, kind: output, shape index: {}]  }
   0x1   :  { %s10_s8 = sshll.u32 %s52_s0, 4  ;;  %s12_s11 = sshll.u32 %s53_s1, 4  ;;  %s11_s8 = int_to_ptr.hbm [resolvable:$true] %s10_s8  ;;  %s13_s11 = int_to_ptr.hbm [resolvable:$true] %s12_s11 }
   0x2   :  { %s35_s14 = smov 0  }
   0x3   :  { %16 = dma.general %s11_s8, 256, %s13_s11, %s33_s12, %s34_s13, [#allocation4], %s35_s14, 0  }
   0x4   :  { %31 = dma.done.wait [#allocation2], 256 }
   0x5   :  { %32 = vsyncadd [#allocation2], 4294967040 }
   0x6   :  { %21 = vsyncmov [#allocation2] }
   0x9   :  { %s22_s15 = vpop.sfrf %21 }
   0xa   :  { %p27_p0 = scmp.ne.s32.totalorder %s22_s15, 0 }
   0xc   :  { %26 = shalt.err (%p27_p0)  }

</bundles_post_ra>
